<compile_context>
chip_gen: v6e
topology: v6e:2x2x1
jax: 0.10.0
libtpu: 0.0.40
codegen_flags: <defaults>
</compile_context>

<pallas_src>
import math

import jax
import jax.numpy as jnp
from jax.experimental import pallas as pl
from jax.experimental.pallas import tpu as pltpu

# VPPrecond defaults
BETA_D = 19.9
BETA_MIN = 0.1
M_STEPS = 1000


def _silu(v):
    # silu(v) = v * sigmoid(v); sigmoid(v) = 0.5*(1 + tanh(0.5*v))  (1 EUP op)
    return v * (0.5 * (1.0 + jnp.tanh(0.5 * v)))


def vp_precond_kernel(x_ref,                 # VMEM (GC, TS)   packed images
                      cin_ref,               # VMEM (1, 1, GC) c_in per column
                      cout_ref,              # VMEM (GC, 1)    c_out per row
                      cob_ref,               # VMEM (GC, 1)    c_out * b2
                      bh_ref,                # VMEM (GH, 1)    b1 + emb(c_noise)
                      w1_ref,                # VMEM (GH, GC)   block-diag W1^T
                      w2_ref,                # VMEM (GC, GH)   block-diag W2^T
                      out_ref):              # VMEM (GC, TS)
    xt = x_ref[...]                                          # (GC, TS) f32

    # Fold c_in (per image) into the tiny first-layer weight instead of scaling
    # the full (GC, TS) tile:  W1 @ (c_in * x) == (W1 * c_in_row) @ x.
    w1s = w1_ref[...] * cin_ref[0]                           # (GH, GC)
    h = _silu(jnp.dot(w1s, xt, preferred_element_type=jnp.float32)
              + bh_ref[...])                                 # (GH, TS)

    # Fold c_out (per image) into the tiny second-layer weight and bias:
    #   c_out * (W2 @ h + b2) == (c_out_col * W2) @ h + c_out*b2.
    w2s = cout_ref[...] * w2_ref[...]                        # (GC, GH)
    out_ref[...] = xt + (jnp.dot(w2s, h, preferred_element_type=jnp.float32)
                         + cob_ref[...])                     # D_x, c_skip = 1


def _pick_ts(S, cap):
    """Largest lane tile: whole S if it fits, else a /128 divisor <= cap."""
    if S <= cap:
        return S
    ts = (cap // 128) * 128
    while ts >= 128:
        if S % ts == 0:
            return ts
        ts -= 128
    return S  # fallback: one block over the whole spatial axis


def vp_precond(x_nchw, sigma, params, *, ts_cap=16384,
               beta_d=BETA_D, beta_min=BETA_MIN, m_steps=M_STEPS):
    """VPPrecond.forward (class_labels=None, label_dim=0). x_nchw: (N,C,H,W)."""
    N, C, H, W = x_nchw.shape
    S = H * W
    w1, b1, wemb, bemb, w2, b2 = params
    Hd = w1.shape[1]

    # Pack G images per block so the sublane axis (G*C) is a multiple of 8.
    G = 8 // math.gcd(C, 8)
    GC = G * C
    GH = G * Hd
    assert GH % 8 == 0, "hidden width must keep the sublane axis 8-aligned"

    # Flat (rows, spatial) layout: rows = image*channel on sublanes, spatial on
    # lanes (lane-dense, unmasked stores).  Merging (N, C) is layout-free.
    x_flat = x_nchw.astype(jnp.float32).reshape(N * C, S)
    sig = jnp.broadcast_to(jnp.asarray(sigma, jnp.float32).reshape(-1), (N,))

    # Pad the batch to a multiple of G (padded images: x = 0, sigma = 1).
    Np = ((N + G - 1) // G) * G
    if Np != N:
        x_flat = jnp.pad(x_flat, ((0, (Np - N) * C), (0, 0)))
        sig = jnp.concatenate([sig, jnp.ones((Np - N,), jnp.float32)])
    NG = Np // G

    # Spatial tile: as large as possible (amortize ~0.35us/step overhead) while
    # the double-buffered in/out tiles + the (GH, ts) hidden activation stay
    # well under the scoped-VMEM defaults on v5e (16 MiB) / v7x (32 MiB).
    vmem_budget = 10 * 1024 * 1024
    ts_vmem = max(128, (vmem_budget // (4 * (4 * GC + GH))) // 128 * 128)
    ts = _pick_ts(S, min(ts_cap, ts_vmem))

    # --- per-image preconditioning coefficients (computed once, wrapper) ---
    c_in = 1.0 / jnp.sqrt(sig * sig + 1.0)
    c_out = -sig
    sigma_inv = (jnp.sqrt(beta_min ** 2 + 2.0 * beta_d * jnp.log(1.0 + sig * sig))
                 - beta_min) / beta_d
    c_noise = (m_steps - 1) * sigma_inv

    # Noise embedding depends only on c_noise -> precompute once per image and
    # pre-add b1, so the kernel does a single broadcast-add on the hidden tile.
    emb = _silu(c_noise[:, None] * jnp.asarray(wemb, jnp.float32).reshape(1, Hd)
                + jnp.asarray(bemb, jnp.float32).reshape(1, Hd))        # (Np, Hd)
    bh_col = (jnp.asarray(b1, jnp.float32).reshape(1, Hd) + emb
              ).reshape(Np * Hd, 1)

    cin_blk = jnp.repeat(c_in, C).reshape(NG, 1, GC)       # scales W1 columns
    cout_col = jnp.repeat(c_out, C).reshape(Np * C, 1)     # scales W2 rows
    cob_col = cout_col * jnp.tile(jnp.asarray(b2, jnp.float32).reshape(C), Np
                                  ).reshape(Np * C, 1)     # c_out * b2 per row

    # Block-diagonal weights: the G packed images share one MXU call per layer.
    w1t = jnp.asarray(w1, jnp.float32).T                   # (Hd, C)
    w2t = jnp.asarray(w2, jnp.float32).T                   # (C, Hd)
    eye_g = jnp.eye(G, dtype=jnp.float32)
    w1bd = jnp.kron(eye_g, w1t)                            # (GH, GC)
    w2bd = jnp.kron(eye_g, w2t)                            # (GC, GH)

    out_flat = pl.pallas_call(
        vp_precond_kernel,
        out_shape=jax.ShapeDtypeStruct((Np * C, S), jnp.float32),
        grid_spec=pltpu.PrefetchScalarGridSpec(
            num_scalar_prefetch=0,
            grid=(NG, S // ts),
            in_specs=[
                pl.BlockSpec((GC, ts), lambda r, t: (r, t)),        # x
                pl.BlockSpec((1, 1, GC), lambda r, t: (r, 0, 0)),   # c_in row
                pl.BlockSpec((GC, 1), lambda r, t: (r, 0)),         # c_out col
                pl.BlockSpec((GC, 1), lambda r, t: (r, 0)),         # c_out*b2
                pl.BlockSpec((GH, 1), lambda r, t: (r, 0)),         # b1 + emb
                pl.BlockSpec((GH, GC), lambda r, t: (0, 0)),        # W1 blockdiag
                pl.BlockSpec((GC, GH), lambda r, t: (0, 0)),        # W2 blockdiag
            ],
            out_specs=pl.BlockSpec((GC, ts), lambda r, t: (r, t)),
        ),
        compiler_params=pltpu.CompilerParams(
            dimension_semantics=("parallel", "parallel")),
    )(x_flat, cin_blk, cout_col, cob_col, bh_col, w1bd, w2bd)

    return out_flat[: N * C].reshape(N, C, H, W)


# ---------------- pure-JAX reference (same math) ----------------
def vp_precond_ref(x_nchw, sigma, params, *,
                   beta_d=BETA_D, beta_min=BETA_MIN, m_steps=M_STEPS):
    w1, b1, wemb, bemb, w2, b2 = params
    N, C, H, W = x_nchw.shape
    S = H * W
    x = x_nchw.astype(jnp.float32)
    sig = jnp.broadcast_to(jnp.asarray(sigma, jnp.float32).reshape(-1), (N,))

    c_skip = 1.0
    c_out = -sig
    c_in = 1.0 / jnp.sqrt(sig * sig + 1.0)
    sigma_inv = (jnp.sqrt(beta_min ** 2 + 2.0 * beta_d * jnp.log(1.0 + sig * sig))
                 - beta_min) / beta_d
    c_noise = (m_steps - 1) * sigma_inv

    arg = (c_in[:, None, None, None] * x).reshape(N, C, S)
    emb = _silu(c_noise[:, None] * wemb.reshape(1, -1)
                + bemb.reshape(1, -1))                               # (N, Hd)
    h = _silu(jnp.einsum('ch,ncs->nhs', w1, arg)
              + b1.reshape(1, -1, 1) + emb[:, :, None])              # (N, Hd, S)
    f_x = jnp.einsum('hc,nhs->ncs', w2, h) + b2.reshape(1, -1, 1)    # (N, C, S)
    d_x = c_skip * x + c_out[:, None, None, None] * f_x.reshape(N, C, H, W)
    return d_x


if __name__ == "__main__":
    N, C, H, W = 2, 4, 16, 16
    Hd = 32

    key = jax.random.PRNGKey(0)
    kx, ks, k1, k2, k3 = jax.random.split(key, 5)

    x = jax.random.normal(kx, (N, C, H, W), jnp.float32)
    sigma = jax.random.uniform(ks, (N,), jnp.float32, 0.3, 2.0)

    # deterministic synthetic weights for the stand-in inner model
    w1 = jax.random.normal(k1, (C, Hd), jnp.float32) / jnp.sqrt(C)
    b1 = jnp.zeros((1, Hd), jnp.float32)
    # c_noise is O(M); keep noise-embedding weights small so activations stay O(1)
    wemb = jax.random.normal(k2, (1, Hd), jnp.float32) / M_STEPS
    bemb = jnp.zeros((1, Hd), jnp.float32)
    w2 = jax.random.normal(k3, (Hd, C), jnp.float32) / jnp.sqrt(Hd)
    b2 = jnp.zeros((1, C), jnp.float32)
    params = (w1, b1, wemb, bemb, w2, b2)

    out = jax.block_until_ready(vp_precond(x, sigma, params))
    ref = vp_precond_ref(x, sigma, params)

    assert out.shape == (N, C, H, W) and out.dtype == jnp.float32
    assert jnp.allclose(out, ref, atol=1e-4, rtol=1e-4), (
        float(jnp.max(jnp.abs(out - ref))))

    print("KERNEL_OK")
</pallas_src>

<mosaic_0001>
module attributes {stable_mosaic.version = 11 : i64} {
  func.func @vp_precond_kernel(%arg0: i32, %arg1: i32, %arg2: memref<8x256xf32, #tpu.memory_space<vmem>>, %arg3: memref<1x1x8xf32, #tpu.memory_space<vmem>>, %arg4: memref<8x1xf32, #tpu.memory_space<vmem>>, %arg5: memref<8x1xf32, #tpu.memory_space<vmem>>, %arg6: memref<64x1xf32, #tpu.memory_space<vmem>>, %arg7: memref<64x8xf32, #tpu.memory_space<vmem>>, %arg8: memref<8x64xf32, #tpu.memory_space<vmem>>, %arg9: memref<8x256xf32, #tpu.memory_space<vmem>>) attributes {dimension_semantics = [#tpu.dimension_semantics<parallel>, #tpu.dimension_semantics<parallel>], iteration_bounds = array<i64: 1, 1>, scalar_prefetch = 0 : i64, scratch_operands = 0 : i64, tpu.core_type = #tpu.core_type<tc>, window_params = [{transform_indices = @transform_0, window_bounds = array<i64: 8, 256>}, {transform_indices = @transform_1, window_bounds = array<i64: 1, 1, 8>}, {transform_indices = @transform_2, window_bounds = array<i64: 8, 1>}, {transform_indices = @transform_3, window_bounds = array<i64: 8, 1>}, {transform_indices = @transform_4, window_bounds = array<i64: 64, 1>}, {pipeline_mode = #tpu.pipeline_mode<synchronous>, transform_indices = @transform_5, window_bounds = array<i64: 64, 8>}, {pipeline_mode = #tpu.pipeline_mode<synchronous>, transform_indices = @transform_6, window_bounds = array<i64: 8, 64>}, {transform_indices = @transform_7, window_bounds = array<i64: 8, 256>}]} {
    %c0 = arith.constant 0 : index
    %c0_0 = arith.constant 0 : index
    %0 = vector.load %arg2[%c0, %c0_0] : memref<8x256xf32, #tpu.memory_space<vmem>>, vector<8x256xf32>
    %c0_1 = arith.constant 0 : index
    %c0_2 = arith.constant 0 : index
    %1 = vector.load %arg7[%c0_1, %c0_2] : memref<64x8xf32, #tpu.memory_space<vmem>>, vector<64x8xf32>
    %c0_3 = arith.constant 0 : index
    %c0_4 = arith.constant 0 : index
    %c0_5 = arith.constant 0 : index
    %2 = vector.load %arg3[%c0_3, %c0_4, %c0_5] : memref<1x1x8xf32, #tpu.memory_space<vmem>>, vector<1x1x8xf32>
    %3 = vector.shape_cast %2 : vector<1x1x8xf32> to vector<1x8xf32>
    %4 = vector.broadcast %3 : vector<1x8xf32> to vector<64x8xf32>
    %5 = arith.mulf %1, %4 : vector<64x8xf32>
    %cst = arith.constant dense<0.000000e+00> : vector<64x256xf32>
    %6 = tpu.matmul %5, %0, %cst {dimension_numbers = #tpu.dot_dimension_numbers<[1], [0], [0], [1], [0, 0, 1, 1], [], []>} : vector<64x8xf32>, vector<8x256xf32>, vector<64x256xf32> -> vector<64x256xf32>
    %c0_6 = arith.constant 0 : index
    %c0_7 = arith.constant 0 : index
    %7 = vector.load %arg6[%c0_6, %c0_7] : memref<64x1xf32, #tpu.memory_space<vmem>>, vector<64x1xf32>
    %8 = vector.broadcast %7 : vector<64x1xf32> to vector<64x256xf32>
    %9 = arith.addf %6, %8 : vector<64x256xf32>
    %cst_8 = arith.constant 5.000000e-01 : f32
    %10 = vector.broadcast %cst_8 : f32 to vector<64x256xf32>
    %11 = arith.mulf %10, %9 : vector<64x256xf32>
    %12 = math.tanh %11 : vector<64x256xf32>
    %cst_9 = arith.constant 1.000000e+00 : f32
    %13 = vector.broadcast %cst_9 : f32 to vector<64x256xf32>
    %14 = arith.addf %13, %12 : vector<64x256xf32>
    %cst_10 = arith.constant 5.000000e-01 : f32
    %15 = vector.broadcast %cst_10 : f32 to vector<64x256xf32>
    %16 = arith.mulf %15, %14 : vector<64x256xf32>
    %17 = arith.mulf %9, %16 : vector<64x256xf32>
    %c0_11 = arith.constant 0 : index
    %c0_12 = arith.constant 0 : index
    %18 = vector.load %arg4[%c0_11, %c0_12] : memref<8x1xf32, #tpu.memory_space<vmem>>, vector<8x1xf32>
    %c0_13 = arith.constant 0 : index
    %c0_14 = arith.constant 0 : index
    %19 = vector.load %arg8[%c0_13, %c0_14] : memref<8x64xf32, #tpu.memory_space<vmem>>, vector<8x64xf32>
    %20 = vector.broadcast %18 : vector<8x1xf32> to vector<8x64xf32>
    %21 = arith.mulf %20, %19 : vector<8x64xf32>
    %cst_15 = arith.constant dense<0.000000e+00> : vector<8x256xf32>
    %22 = tpu.matmul %21, %17, %cst_15 {dimension_numbers = #tpu.dot_dimension_numbers<[1], [0], [0], [1], [0, 0, 1, 1], [], []>} : vector<8x64xf32>, vector<64x256xf32>, vector<8x256xf32> -> vector<8x256xf32>
    %c0_16 = arith.constant 0 : index
    %c0_17 = arith.constant 0 : index
    %23 = vector.load %arg5[%c0_16, %c0_17] : memref<8x1xf32, #tpu.memory_space<vmem>>, vector<8x1xf32>
    %24 = vector.broadcast %23 : vector<8x1xf32> to vector<8x256xf32>
    %25 = arith.addf %22, %24 : vector<8x256xf32>
    %26 = arith.addf %0, %25 : vector<8x256xf32>
    %c0_18 = arith.constant 0 : index
    %c0_19 = arith.constant 0 : index
    %27 = vector.load %arg9[%c0_18, %c0_19] : memref<8x256xf32, #tpu.memory_space<vmem>>, vector<8x256xf32>
    tpu.vector_store %arg9[%c0_18, %c0_19], %26 {strides = array<i32>} : memref<8x256xf32, #tpu.memory_space<vmem>>, vector<8x256xf32>,
    return
  }
  func.func @transform_0(%arg0: i32, %arg1: i32) -> (i32, i32) {
    %c0_i32 = arith.constant 0 : i32
    return %arg0, %arg1 : i32, i32
  }
  func.func @transform_1(%arg0: i32, %arg1: i32) -> (i32, i32, i32) {
    %c0_i32 = arith.constant 0 : i32
    %c0_i32_0 = arith.constant 0 : i32
    %c0_i32_1 = arith.constant 0 : i32
    return %arg0, %c0_i32, %c0_i32_0 : i32, i32, i32
  }
  func.func @transform_2(%arg0: i32, %arg1: i32) -> (i32, i32) {
    %c0_i32 = arith.constant 0 : i32
    %c0_i32_0 = arith.constant 0 : i32
    return %arg0, %c0_i32 : i32, i32
  }
  func.func @transform_3(%arg0: i32, %arg1: i32) -> (i32, i32) {
    %c0_i32 = arith.constant 0 : i32
    %c0_i32_0 = arith.constant 0 : i32
    return %arg0, %c0_i32 : i32, i32
  }
  func.func @transform_4(%arg0: i32, %arg1: i32) -> (i32, i32) {
    %c0_i32 = arith.constant 0 : i32
    %c0_i32_0 = arith.constant 0 : i32
    return %arg0, %c0_i32 : i32, i32
  }
  func.func @transform_5(%arg0: i32, %arg1: i32) -> (i32, i32) {
    %c0_i32 = arith.constant 0 : i32
    %c0_i32_0 = arith.constant 0 : i32
    %c0_i32_1 = arith.constant 0 : i32
    return %c0_i32, %c0_i32_0 : i32, i32
  }
  func.func @transform_6(%arg0: i32, %arg1: i32) -> (i32, i32) {
    %c0_i32 = arith.constant 0 : i32
    %c0_i32_0 = arith.constant 0 : i32
    %c0_i32_1 = arith.constant 0 : i32
    return %c0_i32, %c0_i32_0 : i32, i32
  }
  func.func @transform_7(%arg0: i32, %arg1: i32) -> (i32, i32) {
    %c0_i32 = arith.constant 0 : i32
    return %arg0, %arg1 : i32, i32
  }
}

</mosaic_0001>

<bundles_post_ra>
// kernel: tpu_custom_call.1
= control target key start
LH: loop header
LB: loop body
LE: loop exit
PB: predicated region body
PF: predicated region fallthrough
CT: control target
= control target key end

     0   :  { %v494_v3 = vmov 0.0   ;;  %vm100_vm0 = vcmask 64512   ;;  %v495_v7 = vmov 0   ;;  %s682_s0 = inlined_call_operand.vmem [shape: f32[8,256], index: 0, kind: input, shape index: {}]   ;;  %s683_s1 = inlined_call_operand.vmem [shape: f32[1,1,8], index: 1, kind: input, shape index: {}]   ;;  %s684_s2 = inlined_call_operand.vmem [shape: f32[8,1], index: 2, kind: input, shape index: {}]   ;;  %s685_s3 = inlined_call_operand.vmem [shape: f32[8,1], index: 3, kind: input, shape index: {}]   ;;  %s686_s4 = inlined_call_operand.vmem [shape: f32[64,1], index: 4, kind: input, shape index: {}]   ;;  %s687_s5 = inlined_call_operand.vmem [shape: f32[64,8], index: 5, kind: input, shape index: {}]   ;;  %s688_s6 = inlined_call_operand.vmem [shape: f32[8,64], index: 6, kind: input, shape index: {}]   ;;  %s689_s7 = inlined_call_operand.hbm [shape: f32[8,256], index: 7, kind: output, shape index: {}]  }
   0x1   :  { %v540_v0 = vld [vmem:[%s682_s0 + $0x8] sm:$0xff]  ;;  %v545_v1 = vld [vmem:[%s682_s0] sm:$0xff]  ;;  %189 = vmatprep.mubr.f32.mxu0 %v494_v3  ;;  %439 = vset.pattern.permute.xlu1 %v495_v7  ;;  %v59_v10 = vld [vmem:[%s686_s4 + $0x38] sm:$0xff] }
   0x2   :  { %v29_v2 = vld [vmem:[%s687_s5] sm:$0xff]  ;;  %155 = vmatprep.subr.mxu0 %v540_v0  ;;  %v30_v5 = vld [vmem:[%s687_s5 + $0x8] sm:$0xff]  ;;  %438 = vset.pattern.permute.xlu0 %v495_v7  ;;  %v31_v11 = vld [vmem:[%s687_s5 + $0x10] sm:$0xff] }
   0x3   :  { %v425_v4 = vld [vmem:[%s683_s1] ss:$0 sm:$0xff]  ;;  %156 = vmatpush1.msra.mxu0 %v545_v1  ;;  %v57_v8 = vld [vmem:[%s686_s4 + $0x28] sm:$0xff]  ;;  %400 = vmatprep.mubr.f32.mxu1 %v494_v3  ;;  %v58_v13 = vld [vmem:[%s686_s4 + $0x30] sm:$0xff] }
   0x4   :  { %v44_v6 = vmul.f32 %v425_v4, %v29_v2  ;;  %v45_v9 = vmul.f32 %v425_v4, %v30_v5  ;;  %87 = vperm.xlu1 %439, %v57_v8   ;;  %97 = vperm.xlu0 %438, %v59_v10   ;;  %v56_v12 = vld [vmem:[%s686_s4 + $0x20] sm:$0xff] }
   0x6   :  { %426 = vmatmul.mubr.msk.f32.vlgmr.msra.gmra.mxu0 %vm100_vm0, %v44_v6 }
   0x7   :  { %195 = vmatprep.mubr.f32.mxu0 %v494_v3 }
   0x8   :  { %12 = vsyncpa [#allocation3], 0  ;;  %v46_v14 = vmul.f32 %v425_v4, %v31_v11  ;;  %82 = vperm.xlu1 %439, %v56_v12   ;;  %v32_v15 = vld [vmem:[%s687_s5 + $0x18] sm:$0xff]  ;;  %92 = vperm.xlu0 %438, %v58_v13   ;;  %v54_v16 = vld [vmem:[%s686_s4 + $0x10] sm:$0xff]  ;;  %vm332_vm1 = vcmask 523264   ;;  %s496_s14 = smov [#allocation2]  }
   0x9   :  { %v55_v17 = vld [vmem:[%s686_s4 + $0x18] sm:$0xff]  ;;  %v47_v18 = vmul.f32 %v425_v4, %v32_v15  ;;  %v33_v19 = vld [vmem:[%s687_s5 + $0x20] sm:$0xff]  ;;  %v53_v21 = vld [vmem:[%s686_s4 + $0x8] sm:$0xff]  ;;  %s417_s15 = sshll.u32 %s496_s14, 4  ;;  %s418_s15 = int_to_ptr.vmem [resolvable:$true] %s417_s15 }
   0xa   :  { %427 = vmatmul.mubr.msk.f32.gmra.mxu0 %vm100_vm0, %v45_v9  ;;  %v52_v20 = vld [vmem:[%s686_s4] sm:$0xff]  ;;  %v48_v22 = vmul.f32 %v425_v4, %v33_v19  ;;  %v34_v23 = vld [vmem:[%s687_s5 + $0x28] sm:$0xff]  ;;  %v35_v27 = vld [vmem:[%s687_s5 + $0x30] sm:$0xff]  ;;  %p477_p1 = scmp.lt.s32.totalorder %s418_s15, %s418_s15 }
   0xb   :  { %201 = vmatprep.mubr.f32.mxu0 %v494_v3  ;;  %v326_v24 = vld [vmem:[%s685_s3] sm:$0xff]  ;;  %v49_v26 = vmul.f32 %v425_v4, %v34_v23  ;;  %v50_v28 = vmul.f32 %v425_v4, %v35_v27  ;;  %v36_v29 = vld [vmem:[%s687_s5 + $0x38] sm:$0xff] }
   0xc   :  { %72 = vperm.xlu1 %439, %v54_v16   ;;  %77 = vperm.xlu0 %438, %v55_v17   ;;  %v318_v25 = vld [vmem:[%s684_s2] sm:$0xff]  ;;  %v51_v30 = vmul.f32 %v425_v4, %v36_v29 }
   0xe   :  { %428 = vmatmul.mubr.msk.f32.gmra.mxu0 %vm100_vm0, %v46_v14 }
   0xf   :  { %207 = vmatprep.mubr.f32.mxu0 %v494_v3 }
  0x10   :  { %62 = vperm.xlu1 %439, %v52_v20   ;;  %67 = vperm.xlu0 %438, %v53_v21  }
  0x12   :  { %429 = vmatmul.mubr.msk.f32.gmra.mxu0 %vm100_vm0, %v47_v18 }
  0x13   :  { %213 = vmatprep.mubr.f32.mxu0 %v494_v3 }
  0x14   :  { %329 = vperm.xlu1 %439, %v326_v24   ;;  %322 = vperm.xlu0 %438, %v318_v25  }
  0x16   :  { %430 = vmatmul.mubr.msk.f32.gmra.mxu0 %vm100_vm0, %v48_v22 }
  0x17   :  { %219 = vmatprep.mubr.f32.mxu0 %v494_v3 }
  0x1a   :  { %431 = vmatmul.mubr.msk.f32.gmra.mxu0 %vm100_vm0, %v49_v26 }
  0x1b   :  { %225 = vmatprep.mubr.f32.mxu0 %v494_v3 }
  0x1e   :  { %432 = vmatmul.mubr.msk.f32.gmra.mxu0 %vm100_vm0, %v50_v28 }
  0x1f   :  { %231 = vmatprep.mubr.f32.mxu0 %v494_v3 }
  0x22   :  { %433 = vmatmul.mubr.msk.f32.gmra.mxu0 %vm100_vm0, %v51_v30 }
  0x7f   :  { %v98_v38 = vpop.permute.xlu0 %97  ;;  %v88_v39 = vpop.permute.xlu1 %87 }
  0x83   :  { %v93_v43 = vpop.permute.xlu0 %92  ;;  %v83_v44 = vpop.permute.xlu1 %82 }
  0x87   :  { %v78_v50 = vpop.permute.xlu0 %77  ;;  %v73_v56 = vpop.permute.xlu1 %72 }
  0x8b   :  { %v68_v5 = vpop.permute.xlu0 %67  ;;  %v63_v11 = vpop.permute.xlu1 %62 }
  0xc6   :  { %v191_v31 = vpop.f32.mrf.mxu0 }
  0xc7   :  { %v652_v19 = vadd.f32 %v191_v31, %v63_v11 }
  0xc8   :  { %v193_v32 = vpop.f32.mrf.mxu0 }
  0xc9   :  { %v649_v17 = vadd.f32 %v193_v32, %v63_v11  ;;  %v238_v24 = vmul.f32 0.5, %v652_v19 }
  0xca   :  { %v197_v33 = vpop.f32.mrf.mxu0 }
  0xcb   :  { %v646_v15 = vadd.f32 %v197_v33, %v68_v5  ;;  %v239_v23 = vmul.f32 0.5, %v649_v17 }
  0xcc   :  { %v199_v34 = vpop.f32.mrf.mxu0 }
  0xcd   :  { %v643_v12 = vadd.f32 %v199_v34, %v68_v5  ;;  %v240_v22 = vmul.f32 0.5, %v646_v15 }
  0xce   :  { %v203_v35 = vpop.f32.mrf.mxu0 }
  0xcf   :  { %v639_v8 = vadd.f32 %v203_v35, %v73_v56  ;;  %v241_v21 = vmul.f32 0.5, %v643_v12 }
  0xd0   :  { %v205_v36 = vpop.f32.mrf.mxu0 }
  0xd1   :  { %v637_v6 = vadd.f32 %v205_v36, %v73_v56  ;;  %v242_v20 = vmul.f32 0.5, %v639_v8 }
  0xd2   :  { %v209_v37 = vpop.f32.mrf.mxu0 }
  0xd3   :  { %v632_v63 = vadd.f32 %v209_v37, %v78_v50  ;;  %v243_v18 = vmul.f32 0.5, %v637_v6 }
  0xd4   :  { %v211_v40 = vpop.f32.mrf.mxu0 }
  0xd5   :  { %v629_v61 = vadd.f32 %v211_v40, %v78_v50  ;;  %v244_v16 = vmul.f32 0.5, %v632_v63 }
  0xd6   :  { %v215_v41 = vpop.f32.mrf.mxu0 }
  0xd7   :  { %v625_v58 = vadd.f32 %v215_v41, %v83_v44  ;;  %v245_v13 = vmul.f32 0.5, %v629_v61 }
  0xd8   :  { %v217_v42 = vpop.f32.mrf.mxu0 }
  0xd9   :  { %v614_v46 = vadd.f32 %v217_v42, %v83_v44  ;;  %v246_v9 = vmul.f32 0.5, %v625_v58 }
  0xda   :  { %v221_v45 = vpop.f32.mrf.mxu0 }
  0xdb   :  { %v616_v47 = vadd.f32 %v221_v45, %v88_v39  ;;  %v247_v51 = vmul.f32 0.5, %v614_v46 }
  0xdc   :  { %v223_v48 = vpop.f32.mrf.mxu0 }
  0xdd   :  { %v619_v52 = vadd.f32 %v223_v48, %v88_v39  ;;  %v248_v54 = vmul.f32 0.5, %v616_v47  ;;  %440 = vtanh.f32 %v247_v51 }
  0xde   :  { %v227_v49 = vpop.f32.mrf.mxu0 }
  0xdf   :  { %v621_v53 = vadd.f32 %v227_v49, %v93_v43  ;;  %v249_v62 = vmul.f32 0.5, %v619_v52  ;;  %442 = vtanh.f32 %v248_v54 }
  0xe0   :  { %v229_v55 = vpop.f32.mrf.mxu0 }
  0xe1   :  { %v250_v57 = vmul.f32 0.5, %v621_v53  ;;  %v627_v59 = vadd.f32 %v229_v55, %v93_v43 }
  0xe2   :  { %v233_v60 = vpop.f32.mrf.mxu0 }
  0xe3   :  { %v251_v2 = vmul.f32 0.5, %v627_v59  ;;  %v635_v3 = vadd.f32 %v233_v60, %v98_v38  ;;  %444 = vtanh.f32 %v250_v57 }
  0xe4   :  { %v235_v4 = vpop.f32.mrf.mxu0 }
  0xe5   :  { %v236_v7 = vadd.f32 %v235_v4, %v98_v38  ;;  %446 = vtanh.f32 %v251_v2  ;;  %v252_v10 = vmul.f32 0.5, %v635_v3 }
  0xe6   :  { %448 = vtanh.f32 %v249_v62 }
  0xe7   :  { %v253_v14 = vmul.f32 0.5, %v236_v7  ;;  %450 = vtanh.f32 %v252_v10 }
  0xe9   :  { %452 = vtanh.f32 %v253_v14 }
  0xea   :  { %454 = vtanh.f32 %v246_v9  ;;  %v441_v25 = vpop.eup %440 }
  0xeb   :  { %456 = vtanh.f32 %v245_v13  ;;  %v279_v42 = vadd.f32 1.0, %v441_v25 }
  0xec   :  { %458 = vtanh.f32 %v244_v16  ;;  %v443_v26 = vpop.eup %442 }
  0xed   :  { %460 = vtanh.f32 %v243_v18  ;;  %v280_v39 = vadd.f32 1.0, %v443_v26  ;;  %v295_v5 = vmul.f32 0.5, %v279_v42 }
  0xee   :  { %462 = vtanh.f32 %v242_v20 }
  0xef   :  { %464 = vtanh.f32 %v241_v21  ;;  %v296_v60 = vmul.f32 0.5, %v280_v39 }
  0xf0   :  { %466 = vtanh.f32 %v240_v22  ;;  %v445_v27 = vpop.eup %444 }
  0xf1   :  { %468 = vtanh.f32 %v239_v23  ;;  %v282_v33 = vadd.f32 1.0, %v445_v27  ;;  %v312_v22 = vmul.f32 %v296_v60, %v616_v47 }
  0xf2   :  { %470 = vtanh.f32 %v238_v24  ;;  %v447_v28 = vpop.eup %446  ;;  %v311_v24 = vmul.f32 %v295_v5, %v614_v46 }
  0xf3   :  { %v449_v29 = vpop.eup %448  ;;  %v283_v31 = vadd.f32 1.0, %v447_v28  ;;  %v298_v49 = vmul.f32 0.5, %v282_v33  ;;  %v323_v33 = vpop.permute.xlu0 %322 }
  0xf4   :  { %v451_v30 = vpop.eup %450  ;;  %v281_v36 = vadd.f32 1.0, %v449_v29 }
  0xf5   :  { %v284_v34 = vadd.f32 1.0, %v451_v30  ;;  %v299_v43 = vmul.f32 0.5, %v283_v31  ;;  %v314_v14 = vmul.f32 %v298_v49, %v621_v53 }
  0xf6   :  { %v453_v32 = vpop.eup %452  ;;  %v297_v54 = vmul.f32 0.5, %v281_v36 }
  0xf7   :  { %v455_v35 = vpop.eup %454  ;;  %v285_v37 = vadd.f32 1.0, %v453_v32  ;;  %v300_v40 = vmul.f32 0.5, %v284_v34  ;;  %v315_v9 = vmul.f32 %v299_v43, %v627_v59 }
  0xf8   :  { %v457_v38 = vpop.eup %456  ;;  %v278_v48 = vadd.f32 1.0, %v455_v35  ;;  %v313_v20 = vmul.f32 %v297_v54, %v619_v52 }
  0xf9   :  { %v459_v41 = vpop.eup %458  ;;  %v301_v44 = vmul.f32 0.5, %v285_v37  ;;  %v277_v51 = vadd.f32 1.0, %v457_v38  ;;  %v316_v62 = vmul.f32 %v300_v40, %v635_v3 }
  0xfa   :  { %v461_v45 = vpop.eup %460  ;;  %v276_v57 = vadd.f32 1.0, %v459_v41  ;;  %v294_v13 = vmul.f32 0.5, %v278_v48 }
  0xfb   :  { %v463_v50 = vpop.eup %462  ;;  %v317_v55 = vmul.f32 %v301_v44, %v236_v7  ;;  %v275_v4 = vadd.f32 1.0, %v461_v45  ;;  %v293_v7 = vmul.f32 0.5, %v277_v51 }
  0xfc   :  { %v465_v56 = vpop.eup %464  ;;  %v274_v11 = vadd.f32 1.0, %v463_v50  ;;  %v292_v3 = vmul.f32 0.5, %v276_v57  ;;  %v310_v53 = vmul.f32 %v294_v13, %v625_v58 }
  0xfd   :  { %v467_v2 = vpop.eup %466  ;;  %352 = vmatprep.subr.mxu1 %v317_v55  ;;  %v273_v18 = vadd.f32 1.0, %v465_v56  ;;  %v291_v59 = vmul.f32 0.5, %v275_v4  ;;  %v309_v28 = vmul.f32 %v293_v7, %v629_v61  ;;  %v319_v61 = vld [vmem:[%s688_s6] sm:$0xff]  ;;  %s472_s6 = scalar_lea.vmem %s418_s15, 256 }
  0xfe   :  { %v469_v10 = vpop.eup %468  ;;  %353 = vmatpush1.msra.mxu1 %v316_v62  ;;  %v272_v21 = vadd.f32 1.0, %v467_v2  ;;  %v290_v26 = vmul.f32 0.5, %v274_v11  ;;  %v308_v29 = vmul.f32 %v292_v3, %v632_v63  ;;  %p473_p0 = scmp.ne.s32.totalorder %s418_s15, %s472_s6  ;;  %p478_p2 = scmp.lt.s32.totalorder %s472_s6, %s472_s6 }
  0xff   :  { %v471_v16 = vpop.eup %470  ;;  %354 = vmatprep.subr.mxu1 %v315_v9  ;;  %v271_v23 = vadd.f32 1.0, %v469_v10  ;;  %v289_v27 = vmul.f32 0.5, %v273_v18  ;;  %v307_v30 = vmul.f32 %v291_v59, %v637_v6 }
 0x100   :  { %355 = vmatpush1.msra.mxu1 %v314_v14  ;;  %v270_v25 = vadd.f32 1.0, %v471_v16  ;;  %v288_v52 = vmul.f32 0.5, %v272_v21  ;;  %v306_v46 = vmul.f32 %v290_v26, %v639_v8  ;;  %v325_v8 = vmul.f32 %v323_v33, %v319_v61  ;;  %p479_p3 = por %p478_p2, %p477_p1 }
 0x101   :  { %356 = vmatprep.subr.mxu1 %v313_v20  ;;  %v287_v47 = vmul.f32 0.5, %v271_v23  ;;  %v305_v32 = vmul.f32 %v289_v27, %v643_v12  ;;  %v330_v12 = vpop.permute.xlu1 %329 }
 0x102   :  { %357 = vmatpush1.msra.mxu1 %v312_v22  ;;  %v286_v31 = vmul.f32 0.5, %v270_v25  ;;  %v304_v58 = vmul.f32 %v288_v52, %v646_v15  ;;  %p480_p4 = pnand %p479_p3, %p473_p0 }
 0x103   :  { %358 = vmatprep.subr.mxu1 %v311_v24  ;;  %v303_v63 = vmul.f32 %v287_v47, %v649_v17 }
 0x104   :  { %359 = vmatpush1.msra.mxu1 %v310_v53  ;;  %v302_v6 = vmul.f32 %v286_v31, %v652_v19 }
 0x105   :  { %360 = vmatprep.subr.mxu1 %v309_v28 }
 0x106   :  { %361 = vmatpush1.msra.mxu1 %v308_v29 }
 0x107   :  { %362 = vmatprep.subr.mxu1 %v307_v30 }
 0x108   :  { %363 = vmatpush1.msra.mxu1 %v306_v46 }
 0x109   :  { %364 = vmatprep.subr.mxu1 %v305_v32 }
 0x10a   :  { %365 = vmatpush1.msra.mxu1 %v304_v58 }
 0x10b   :  { %366 = vmatprep.subr.mxu1 %v303_v63 }
 0x10c   :  { %367 = vmatpush1.msra.mxu1 %v302_v6 }
 0x10d   :  { %434 = vmatmul.mubr.msk.f32.vlgmr.msra.gmra.mxu1 %vm332_vm1, %v325_v8 }
 0x1cd   :  { %v402_v34 = vpop.f32.mrf.mxu1 }
 0x1ce   :  { %v403_v15 = vadd.f32 %v402_v34, %v330_v12 }
 0x1cf   :  { %v404_v35 = vpop.f32.mrf.mxu1 }
 0x1d0   :  { %v407_v36 = vadd.f32 %v403_v15, %v545_v1  ;;  %v405_v37 = vadd.f32 %v404_v35, %v330_v12 }
 0x1d2   :  { %409 = vst [vmem:[#allocation2] sm:$0xff] %v407_v36  ;;  %v408_v17 = vadd.f32 %v405_v37, %v540_v0 }
 0x1d4   :  { %410 = vst [vmem:[#allocation2 + $0x8] sm:$0xff] %v408_v17 }
 0x1d5   :  { %483 = shalt.err (!%p480_p4)
}
 0x1d6   :  { %420 = dma.vmem_to_hbm [thread:$0]  %s418_s15, 256, %s689_s7, [#allocation3]  }
 0x1d7   :  { %492 = dma.done.wait [#allocation3], 256  }
 0x1d8   :  { %493 = vsyncadd [#allocation3], 4294967040 }
 0x1d9   :  { %424 = vsyncpa [#allocation3], 1 }

</bundles_post_ra>
